<compile_context>
chip_gen: v7x
topology: tpu7x:2x2x1
jax: 0.10.0
libtpu: 0.0.40
codegen_flags: <defaults>
</compile_context>

<pallas_src>
import jax
import jax.numpy as jnp
from jax.experimental import pallas as pl
from jax.experimental.pallas import tpu as pltpu

# ---- synthetic model dimensions (small, consistent with the forward) --------
B = 2            # batch
C_IN_X = 4       # utterance input channels
H, W = 16, 16    # utterance spatial
S = H * W        # 256  (lane axis inside the kernel)
C_Z = 8          # utterance latent channels (ue outputs 2*C_Z)

C_IN_Y = 4       # face input channels
HF, WF = 16, 16  # face spatial
SY = HF * WF     # 256
C_C = 8          # face latent channels (fe outputs 2*C_C)

C_OUT = 4        # decoder output channels (ud outputs 2*C_OUT)

# Flattened (batch * channel) sublane extents: all exactly one 8-sublane tile.
RX = B * C_IN_X          # 8
RY = B * C_IN_Y          # 8
RO = B * C_OUT           # 8
W_PACK = RX + RY + 1     # 17 packed-weight lanes: [W_blk | A_blk | bias]


def crossmodal_kernel(x_ref, y_ref, w_ref, out_ref):
    """Single grid step, no batch loop: one matmul + one lane reduce + one store."""
    x = x_ref[...]                                   # (RX, S)  full (8,256) tile
    y = y_ref[...]                                   # (RY, SY) full (8,256) tile

    # Static slices of the packed weight slab (tiny, within one vreg tile).
    w_blk = w_ref[:, 0:RX]                           # (RO, RX)  block-diag folded W
    a_blk = w_ref[:, RX:RX + RY]                     # (RO, RY)  block-diag folded A
    bias = w_ref[:, RX + RY:W_PACK]                  # (RO, 1)   folded total bias

    # Face path: spatial mean FIRST (lane-axis XLU reduce), then 8x8x1 MACs.
    ymean = jnp.mean(y, axis=-1, keepdims=True)                              # (RY, 1)
    face_bias = jnp.dot(a_blk, ymean,
                        preferred_element_type=jnp.float32) + bias           # (RO, 1)

    # Whole batch in one (8,8)@(8,256) matmul; broadcast-add the per-row face term;
    # single unmasked full-tile store.
    out_ref[...] = (jnp.dot(w_blk, x, preferred_element_type=jnp.float32)
                    + face_bias).astype(out_ref.dtype)                       # (RO, S)


def crossmodal_forward(x_nchw, y_nchw, params):
    """x_nchw: (B, C_IN_X, H, W), y_nchw: (B, C_IN_Y, HF, WF) -> (B, C_OUT, H, W)."""
    wue, bue, wfe, bfe, wud, bud = params

    # One-time wrapper-side algebra: keep only the used chunk halves, fold BOTH
    # encoders into the decoder (all layers are linear), block-diagonalize over
    # the batch, and pack every small operand into one slab.
    wue_h = wue[:, :C_Z]            # (C_IN_X, C_Z)
    bue_h = bue[:, :C_Z]            # (1, C_Z)
    wfe_h = wfe[:, :C_C]            # (C_IN_Y, C_C)
    bfe_h = bfe[:, :C_C]            # (1, C_C)
    wud_z = wud[:C_Z, :C_OUT]       # (C_Z, C_OUT)
    wud_c = wud[C_Z:, :C_OUT]       # (C_C, C_OUT)
    bud_h = bud[:, :C_OUT]          # (1, C_OUT)

    w_x = (wue_h @ wud_z).T                                   # (C_OUT, C_IN_X)
    a = (wfe_h @ wud_c).T                                     # (C_OUT, C_IN_Y)
    beff = (bue_h @ wud_z + bfe_h @ wud_c + bud_h).T          # (C_OUT, 1)

    eye_b = jnp.eye(B, dtype=jnp.float32)
    w_blk = jnp.kron(eye_b, w_x)                              # (RO, RX) block-diag
    a_blk = jnp.kron(eye_b, a)                                # (RO, RY) block-diag
    bias_blk = jnp.tile(beff, (B, 1))                         # (RO, 1)
    packed = jnp.concatenate([w_blk, a_blk, bias_blk], axis=1)  # (RO, W_PACK)

    # NCHW is channels-first: pure reshapes to full (8,256) sublane tiles.
    xs = x_nchw.reshape(RX, S)
    ys = y_nchw.reshape(RY, SY)

    out = pl.pallas_call(
        crossmodal_kernel,
        out_shape=jax.ShapeDtypeStruct((RO, S), jnp.float32),
        grid_spec=pltpu.PrefetchScalarGridSpec(
            num_scalar_prefetch=0,
            grid=(1,),  # single step: whole problem (<100 KiB) fits VMEM everywhere
            in_specs=[
                pl.BlockSpec((RX, S), lambda i: (0, 0)),
                pl.BlockSpec((RY, SY), lambda i: (0, 0)),
                pl.BlockSpec((RO, W_PACK), lambda i: (0, 0)),
            ],
            out_specs=pl.BlockSpec((RO, S), lambda i: (0, 0)),
        ),
        compiler_params=pltpu.CompilerParams(
            dimension_semantics=("arbitrary",)),
    )(xs, ys, packed)

    # (B*C_OUT, S) -> NCHW is a pure reshape.
    return out.reshape(B, C_OUT, H, W)


def forward_reference(x_nchw, y_nchw, params):
    """Pure-JAX reference of the original (unfolded, unsliced) forward semantics."""
    wue, bue, wfe, bfe, wud, bud = params
    xs = jnp.transpose(x_nchw, (0, 2, 3, 1)).reshape(B, S, C_IN_X)
    ys = jnp.transpose(y_nchw, (0, 2, 3, 1)).reshape(B, SY, C_IN_Y)
    h_u = xs @ wue + bue
    z = h_u[..., :C_Z]
    h_f = ys.mean(axis=1) @ wfe + bfe
    c = h_f[..., :C_C]
    h_d = z @ wud[:C_Z] + (c @ wud[C_Z:])[:, None, :] + bud
    out = h_d[..., :C_OUT]
    return jnp.transpose(out.reshape(B, H, W, C_OUT), (0, 3, 1, 2))


def make_params(key):
    ks = jax.random.split(key, 6)
    wue = 0.1 * jax.random.normal(ks[0], (C_IN_X, 2 * C_Z), jnp.float32)
    bue = 0.1 * jax.random.normal(ks[1], (1, 2 * C_Z), jnp.float32)
    wfe = 0.1 * jax.random.normal(ks[2], (C_IN_Y, 2 * C_C), jnp.float32)
    bfe = 0.1 * jax.random.normal(ks[3], (1, 2 * C_C), jnp.float32)
    wud = 0.1 * jax.random.normal(ks[4], (C_Z + C_C, 2 * C_OUT), jnp.float32)
    bud = 0.1 * jax.random.normal(ks[5], (1, 2 * C_OUT), jnp.float32)
    return (wue, bue, wfe, bfe, wud, bud)


if __name__ == "__main__":
    key = jax.random.PRNGKey(0)
    kx, ky, kp = jax.random.split(key, 3)
    x = jax.random.normal(kx, (B, C_IN_X, H, W), jnp.float32)    # utterance (NCHW)
    y = jax.random.normal(ky, (B, C_IN_Y, HF, WF), jnp.float32)  # face (NCHW)
    params = make_params(kp)

    out = jax.block_until_ready(crossmodal_forward(x, y, params))
    ref = jax.block_until_ready(forward_reference(x, y, params))

    assert out.shape == (B, C_OUT, H, W), out.shape
    assert jnp.allclose(out, ref, atol=1e-5, rtol=1e-5), \
        float(jnp.max(jnp.abs(out - ref)))
    print("KERNEL_OK")
</pallas_src>

<mosaic_0001>
module attributes {stable_mosaic.version = 11 : i64} {
  func.func @crossmodal_kernel(%arg0: i32, %arg1: memref<8x256xf32, #tpu.memory_space<vmem>>, %arg2: memref<8x256xf32, #tpu.memory_space<vmem>>, %arg3: memref<8x17xf32, #tpu.memory_space<vmem>>, %arg4: memref<8x256xf32, #tpu.memory_space<vmem>>) attributes {dimension_semantics = [#tpu.dimension_semantics<arbitrary>], iteration_bounds = array<i64: 1>, scalar_prefetch = 0 : i64, scratch_operands = 0 : i64, tpu.core_type = #tpu.core_type<tc>, window_params = [{pipeline_mode = #tpu.pipeline_mode<synchronous>, transform_indices = @transform_0, window_bounds = array<i64: 8, 256>}, {pipeline_mode = #tpu.pipeline_mode<synchronous>, transform_indices = @transform_1, window_bounds = array<i64: 8, 256>}, {pipeline_mode = #tpu.pipeline_mode<synchronous>, transform_indices = @transform_2, window_bounds = array<i64: 8, 17>}, {pipeline_mode = #tpu.pipeline_mode<synchronous>, transform_indices = @transform_3, window_bounds = array<i64: 8, 256>}]} {
    %c0 = arith.constant 0 : index
    %c0_0 = arith.constant 0 : index
    %0 = vector.load %arg1[%c0, %c0_0] : memref<8x256xf32, #tpu.memory_space<vmem>>, vector<8x256xf32>
    %c0_1 = arith.constant 0 : index
    %c0_2 = arith.constant 0 : index
    %1 = vector.load %arg2[%c0_1, %c0_2] : memref<8x256xf32, #tpu.memory_space<vmem>>, vector<8x256xf32>
    %c0_3 = arith.constant 0 : index
    %c0_4 = arith.constant 0 : index
    %2 = vector.load %arg3[%c0_3, %c0_4] : memref<8x17xf32, #tpu.memory_space<vmem>>, vector<8x8xf32>
    %c0_5 = arith.constant 0 : index
    %c8 = arith.constant 8 : index
    %3 = vector.load %arg3[%c0_5, %c8] : memref<8x17xf32, #tpu.memory_space<vmem>>, vector<8x8xf32>
    %c0_6 = arith.constant 0 : index
    %c16 = arith.constant 16 : index
    %4 = vector.load %arg3[%c0_6, %c16] : memref<8x17xf32, #tpu.memory_space<vmem>>, vector<8x1xf32>
    %cst = arith.constant dense<0.000000e+00> : vector<8xf32>
    %5 = vector.multi_reduction <add>, %1, %cst [1] : vector<8x256xf32> to vector<8xf32>
    %6 = vector.shape_cast %5 : vector<8xf32> to vector<8x1xf32>
    %cst_7 = arith.constant 2.560000e+02 : f32
    %7 = vector.broadcast %cst_7 : f32 to vector<8x1xf32>
    %8 = arith.divf %6, %7 : vector<8x1xf32>
    %cst_8 = arith.constant dense<0.000000e+00> : vector<8x1xf32>
    %9 = tpu.matmul %3, %8, %cst_8 {dimension_numbers = #tpu.dot_dimension_numbers<[1], [0], [0], [1], [0, 0, 1, 1], [], []>} : vector<8x8xf32>, vector<8x1xf32>, vector<8x1xf32> -> vector<8x1xf32>
    %10 = arith.addf %9, %4 : vector<8x1xf32>
    %cst_9 = arith.constant dense<0.000000e+00> : vector<8x256xf32>
    %11 = tpu.matmul %2, %0, %cst_9 {dimension_numbers = #tpu.dot_dimension_numbers<[1], [0], [0], [1], [0, 0, 1, 1], [], []>} : vector<8x8xf32>, vector<8x256xf32>, vector<8x256xf32> -> vector<8x256xf32>
    %12 = vector.broadcast %10 : vector<8x1xf32> to vector<8x256xf32>
    %13 = arith.addf %11, %12 : vector<8x256xf32>
    %c0_10 = arith.constant 0 : index
    %c0_11 = arith.constant 0 : index
    %14 = vector.load %arg4[%c0_10, %c0_11] : memref<8x256xf32, #tpu.memory_space<vmem>>, vector<8x256xf32>
    tpu.vector_store %arg4[%c0_10, %c0_11], %13 {strides = array<i32>} : memref<8x256xf32, #tpu.memory_space<vmem>>, vector<8x256xf32>,
    return
  }
  func.func @transform_0(%arg0: i32) -> (i32, i32) {
    %c0_i32 = arith.constant 0 : i32
    %c0_i32_0 = arith.constant 0 : i32
    %c0_i32_1 = arith.constant 0 : i32
    return %c0_i32, %c0_i32_0 : i32, i32
  }
  func.func @transform_1(%arg0: i32) -> (i32, i32) {
    %c0_i32 = arith.constant 0 : i32
    %c0_i32_0 = arith.constant 0 : i32
    %c0_i32_1 = arith.constant 0 : i32
    return %c0_i32, %c0_i32_0 : i32, i32
  }
  func.func @transform_2(%arg0: i32) -> (i32, i32) {
    %c0_i32 = arith.constant 0 : i32
    %c0_i32_0 = arith.constant 0 : i32
    %c0_i32_1 = arith.constant 0 : i32
    return %c0_i32, %c0_i32_0 : i32, i32
  }
  func.func @transform_3(%arg0: i32) -> (i32, i32) {
    %c0_i32 = arith.constant 0 : i32
    %c0_i32_0 = arith.constant 0 : i32
    %c0_i32_1 = arith.constant 0 : i32
    return %c0_i32, %c0_i32_0 : i32, i32
  }
}

</mosaic_0001>

<bundles_post_ra>
// kernel: tpu_custom_call.1
= control target key start
LH: loop header
LB: loop body
LE: loop exit
PB: predicated region body
PF: predicated region fallthrough
CT: control target
= control target key end

     0   :  { %8 = vsyncpa [#allocation3], 0  ;;  %s426_s0 = inlined_call_operand.hbm [shape: f32[8,256], index: 0, kind: input, shape index: {}]   ;;  %s427_s1 = inlined_call_operand.hbm [shape: f32[8,256], index: 1, kind: input, shape index: {}]   ;;  %s428_s2 = inlined_call_operand.hbm [shape: f32[8,17], index: 2, kind: input, shape index: {}]   ;;  %s429_s3 = inlined_call_operand.hbm [shape: f32[8,256], index: 3, kind: output, shape index: {}]  }
   0x1   :  { %9 = vsyncpa [#allocation6], 0 }
   0x2   :  { %10 = vsyncpa [#allocation4], 0  ;;  %s349_s12 = smov [#allocation5]   ;;  %s350_s14 = smov [#allocation2]  }
   0x3   :  { %s27_s13 = sshll.u32 %s349_s12, 4  ;;  %s17_s15 = sshll.u32 %s350_s14, 4  ;;  %s28_s13 = int_to_ptr.vmem [resolvable:$true] %s27_s13  ;;  %s18_s15 = int_to_ptr.vmem [resolvable:$true] %s17_s15 }
   0x4   :  { %s255_s18 = scalar_lea.hbm %s427_s1, 256 }
   0x5   :  { %p256_p0 = scmp.ne.s32.totalorder %s427_s1, %s255_s18  ;;  %p259_p1 = scmp.lt.u32.totalorder %s255_s18, %s427_s1 }
   0x7   :  { %p261_p2 = pnand %p259_p1, %p256_p0 }
   0x9   :  { %264 = shalt.err (!%p261_p2)
}
   0xa   :  { %s265_s23 = scalar_lea.vmem %s28_s13, 256  ;;  %p270_p4 = scmp.lt.s32.totalorder %s28_s13, %s28_s13 }
   0xb   :  { %p266_p3 = scmp.ne.s32.totalorder %s28_s13, %s265_s23  ;;  %p271_p5 = scmp.lt.s32.totalorder %s265_s23, %s265_s23 }
   0xd   :  { %p272_p6 = por %p271_p5, %p270_p4 }
   0xf   :  { %p273_p7 = pnand %p272_p6, %p266_p3 }
  0x11   :  { %276 = shalt.err (!%p273_p7)
}
  0x12   :  { %30 = dma.hbm_to_vmem [thread:$0]  %s427_s1, 256, %s28_s13, [#allocation6]  }
  0x13   :  { %s277_s28 = scalar_lea.hbm %s426_s0, 256 }
  0x14   :  { %p278_p8 = scmp.ne.s32.totalorder %s426_s0, %s277_s28  ;;  %p281_p9 = scmp.lt.u32.totalorder %s277_s28, %s426_s0 }
  0x16   :  { %p283_p10 = pnand %p281_p9, %p278_p8 }
  0x18   :  { %286 = shalt.err (!%p283_p10)
}
  0x19   :  { %s287_s6 = scalar_lea.vmem %s18_s15, 256  ;;  %p292_p12 = scmp.lt.s32.totalorder %s18_s15, %s18_s15 }
  0x1a   :  { %p288_p11 = scmp.ne.s32.totalorder %s18_s15, %s287_s6  ;;  %p293_p13 = scmp.lt.s32.totalorder %s287_s6, %s287_s6 }
  0x1c   :  { %p294_p0 = por %p293_p13, %p292_p12 }
  0x1e   :  { %p295_p1 = pnand %p294_p0, %p288_p11 }
  0x20   :  { %298 = shalt.err (!%p295_p1)
}
  0x21   :  { %20 = dma.hbm_to_vmem [thread:$0]  %s426_s0, 256, %s18_s15, [#allocation3]  }
  0x22   :  { %s351_s8 = smov [#allocation7]   ;;  %s299_s12 = scalar_lea.hbm %s428_s2, 128 }
  0x23   :  { %s37_s9 = sshll.u32 %s351_s8, 4  ;;  %p300_p2 = scmp.ne.s32.totalorder %s428_s2, %s299_s12  ;;  %s38_s9 = int_to_ptr.vmem [resolvable:$true] %s37_s9 }
  0x24   :  { %p303_p3 = scmp.lt.u32.totalorder %s299_s12, %s428_s2 }
  0x26   :  { %p305_p4 = pnand %p303_p3, %p300_p2 }
  0x28   :  { %308 = shalt.err (!%p305_p4)
}
  0x29   :  { %s309_s18 = scalar_lea.vmem %s38_s9, 128  ;;  %p314_p6 = scmp.lt.s32.totalorder %s38_s9, %s38_s9 }
  0x2a   :  { %p310_p5 = scmp.ne.s32.totalorder %s38_s9, %s309_s18  ;;  %p315_p7 = scmp.lt.s32.totalorder %s309_s18, %s309_s18 }
  0x2c   :  { %p316_p8 = por %p315_p7, %p314_p6 }
  0x2e   :  { %p317_p9 = pnand %p316_p8, %p310_p5 }
  0x30   :  { %320 = shalt.err (!%p317_p9)
}
  0x31   :  { %40 = dma.hbm_to_vmem [thread:$0]  %s428_s2, 128, %s38_s9, [#allocation6]  }
  0x32   :  { %343 = dma.done.wait [#allocation3], 256  }
  0x33   :  { %344 = vsyncadd [#allocation3], 4294967040 }
  0x34   :  { %345 = dma.done.wait [#allocation6], 384  }
  0x35   :  { %346 = vsyncadd [#allocation6], 4294966912  ;;  %v52_v0 = vld [vmem:[#allocation5] sm:$0xff]  ;;  %v53_v1 = vld [vmem:[#allocation5 + $0x8] sm:$0xff]  ;;  %v352_v3 = vmov 0.0   ;;  %vm353_vm0 = vmmov 0  }
  0x36   :  { %v55_v2 = vadd.f32 %v53_v1, %v52_v0  ;;  %239 = vmatprep.subr.mxu0 %v352_v3  ;;  %210 = vmatprep.mubr.f32.mxu1 %v352_v3  ;;  %v54_v4 = vld [vmem:[#allocation7] sm:$0xff]  ;;  %v51_v5 = vld [vmem:[#allocation2 + $0x8] sm:$0xff]  ;;  %s354_s19 = smov 112   ;;  %vm66_vm1 = vcmask 64512   ;;  %s355_s2 = smov 120   ;;  %v356_v10 = vmov 0  }
  0x37   :  { %241 = vmatprep.mubr.msk.f32.mxu0 %vm353_vm0, %v352_v3  ;;  %v50_v6 = vld [vmem:[#allocation2] sm:$0xff]  ;;  %63 = vrot.lane.b32.xlu1 %v54_v4, %s354_s19  ;;  %s357_s20 = smov [#allocation8]  }
  0x38   :  { %56 = vadd.xlane.f32.xlu0 %v55_v2  ;;  %146 = vmatprep.subr.mxu1 %v51_v5  ;;  %s225_s21 = sshll.u32 %s357_s20, 4  ;;  %s226_s21 = int_to_ptr.vmem [resolvable:$true] %s225_s21 }
  0x39   :  { %147 = vmatpush1.msra.mxu1 %v50_v6  ;;  %253 = vset.pattern.permute.xlu1 %v356_v10  ;;  %s321_s22 = scalar_lea.vmem %s226_s21, 256  ;;  %p326_p11 = scmp.lt.s32.totalorder %s226_s21, %s226_s21 }
  0x3a   :  { %236 = vmatmul.mubr.msk.f32.vlgmr.msra.gmra.mrb[0].mxu1 %vm66_vm1, %v54_v4  ;;  %254 = vset.pattern.permute.xlu0 %v356_v10  ;;  %p322_p10 = scmp.ne.s32.totalorder %s226_s21, %s321_s22  ;;  %p327_p12 = scmp.lt.s32.totalorder %s321_s22, %s321_s22 }
  0x3c   :  { %p328_p13 = por %p327_p12, %p326_p11 }
  0x3e   :  { %p329_p0 = pnand %p328_p13, %p322_p10 }
  0x4e   :  { %61 = vrot.lane.b32.xlu0 %v54_v4, %s355_s2 }
  0xa9   :  { %v64_v13 = vpop.permute.xlu1 %63 }
  0xc5   :  { %v57_v7 = vpop.xlane.xlu0 %56 }
  0xc6   :  { %v59_v8 = vmul.f32 0.00390625, %v57_v7 }
  0xc8   :  { %240 = vmatpush3.msra.mxu0 %v59_v8 }
  0xc9   :  { %v62_v9 = vpop.permute.xlu0 %61 }
  0xca   :  { %242 = vmatmul.mubr.msk.f32.vlgmr.msra.gmra.mrb[0].mxu0 %vm66_vm1, %v62_v9 }
 0x10d   :  { %v212_v11 = vpop.f32.mrb[0].mxu1 }
 0x10e   :  { %v214_v12 = vpop.f32.mrb[1].mxu1 }
 0x19d   :  { %v135_v14 = vpop.f32.mrb[0].mxu0 }
 0x19e   :  { %v136_v15 = vadd.f32 %v135_v14, %v64_v13  ;;  %v243_v16 = vpop.f32.mrb[1].mxu0 }
 0x1a0   :  { %141 = vperm.xlu1 %253, %v136_v15  }
 0x21f   :  { %v142_v17 = vpop.permute.xlu1 %141 }
 0x220   :  { %v213_v18 = vadd.f32 %v212_v11, %v142_v17  ;;  %v215_v19 = vadd.f32 %v214_v12, %v142_v17 }
 0x222   :  { %217 = vst [vmem:[#allocation8] sm:$0xff] %v213_v18  ;;  %218 = vst [vmem:[#allocation8 + $0x8] sm:$0xff] %v215_v19 }
 0x223   :  { %332 = shalt.err (!%p329_p0)
}
 0x224   :  { %s333_s25 = scalar_lea.hbm %s429_s3, 256 }
 0x225   :  { %p334_p1 = scmp.ne.s32.totalorder %s429_s3, %s333_s25  ;;  %p337_p2 = scmp.lt.u32.totalorder %s333_s25, %s429_s3 }
 0x227   :  { %p339_p3 = pnand %p337_p2, %p334_p1 }
 0x229   :  { %342 = shalt.err (!%p339_p3)
}
 0x22a   :  { %228 = dma.vmem_to_hbm [thread:$0]  %s226_s21, 256, %s429_s3, [#allocation4]  }
 0x22b   :  { %347 = dma.done.wait [#allocation4], 256  }
 0x22c   :  { %348 = vsyncadd [#allocation4], 4294967040 }
 0x22d   :  { %232 = vsyncpa [#allocation3], 1 }
 0x22e   :  { %233 = vsyncpa [#allocation6], 1 }
 0x22f   :  { %234 = vsyncpa [#allocation4], 1 }

</bundles_post_ra>
